<compile_context>
chip_gen: v5e
topology: v5e:2x2
jax: 0.10.0
libtpu: 0.0.40
codegen_flags: <defaults>
</compile_context>

<pallas_src>
import functools
import math

import numpy as np
import jax
import jax.numpy as jnp
from jax.experimental import pallas as pl
from jax.experimental.pallas import tpu as pltpu

# Physical constants (identical to the PyTorch module).
_E = 1.602176634e-19
_KB = 1.380649e-23
_EPS0 = 8.854187817e-12


def _round_up(x, m):
    return ((x + m - 1) // m) * m


# ---------------------------------------------------------------------------
# Cyclic-shift helper.  pltpu.roll is the fast XLU path; a one-off probe
# verifies its direction, otherwise we fall back to jnp.roll.
# ---------------------------------------------------------------------------
_ROLL_MODE_CACHE = []


def _probe_roll_mode():
    x = np.arange(8 * 128, dtype=np.float32).reshape(8, 128)

    def k(x_ref, o_ref):
        o_ref[...] = pltpu.roll(x_ref[...], 1, axis=1)

    try:
        y = np.asarray(pl.pallas_call(
            k, out_shape=jax.ShapeDtypeStruct((8, 128), jnp.float32))(x))
    except Exception:
        return "jnp"
    if np.array_equal(y, np.roll(x, 1, axis=1)):
        return "numpy"
    if np.array_equal(y, np.roll(x, -1, axis=1)):
        return "inverse"
    return "jnp"


def _roll_mode():
    if not _ROLL_MODE_CACHE:
        _ROLL_MODE_CACHE.append(_probe_roll_mode())
    return _ROLL_MODE_CACHE[0]


def _shift(x, delta, *, axis, mode):
    """Returns y with y[..., i, ...] = x[..., (i + delta) % n, ...]."""
    n = x.shape[axis]
    d = delta % n
    if d == 0:
        return x
    if mode == "numpy":        # pltpu.roll behaves like jnp.roll
        return pltpu.roll(x, n - d, axis=axis)
    if mode == "inverse":      # pltpu.roll shifts the opposite way
        return pltpu.roll(x, d, axis=axis)
    return jnp.roll(x, n - d, axis=axis)


# ---------------------------------------------------------------------------
# Kernel 1: interface Laplacian (divergence form) + masked MSE partial sums.
#   grid = (nh, B); constants indexed by h only (resident across the batch);
#   z halo comes from 8-row neighbour blocks; the output (1,1,128) block is
#   resident across b and only written on the last batch step.
# ---------------------------------------------------------------------------
def _lapl_loss_kernel(fc_ref, fp_ref, fn_ref, ex_ref, ey_ref, ez_ref, ezp_ref,
                      msel_ref, kw2_ref, out_ref, acc_ref, *, L, roll_mode):
    b = pl.program_id(1)
    TH, WL = ex_ref.shape
    sh = functools.partial(_shift, mode=roll_mode)

    @pl.when(b == 0)
    def _():
        acc_ref[...] = jnp.zeros_like(acc_ref)

    f = fc_ref[0]                                    # raw (un-normalized) slab

    # x direction: lane stride 1.  ex is pre-zeroed at l == L-1 so the wrapped
    # +1 shift contributes 0; non-interior lanes are killed by the mask.
    fx = ex_ref[...] * (sh(f, 1, axis=1) - f)
    div = fx - sh(fx, -1, axis=1)

    # y direction: lane stride L.  ey pre-zeroed at w == W-1.
    fy = ey_ref[...] * (sh(f, L, axis=1) - f)
    div += fy - sh(fy, -L, axis=1)

    # z direction: sublane axis; single-row halos from neighbouring 8-row blocks.
    row = jax.lax.broadcasted_iota(jnp.int32, (TH, WL), 0)
    f_up = jnp.where(row == TH - 1, fn_ref[0, 0:1, :], sh(f, 1, axis=0))
    fz = ez_ref[...] * (f_up - f)
    fz_m1 = ezp_ref[7:8, :] * (f[0:1, :] - fp_ref[0, 7:8, :])
    fz_dn = jnp.where(row == 0, fz_m1, sh(fz, -1, axis=0))
    div += fz - fz_dn

    # masked residuals (ternary mask: +1 inner&interior, -1 outer&interior).
    msel = msel_ref[...]
    res_in = div * jnp.maximum(msel, 0.0)
    res_out = div * jnp.maximum(-msel, 0.0) - kw2_ref[...] * f
    acc_ref[0:1, :] += jnp.sum(res_in * res_in, axis=0, keepdims=True)
    acc_ref[1:2, :] += jnp.sum(res_out * res_out, axis=0, keepdims=True)

    @pl.when(b == pl.num_programs(1) - 1)
    def _():
        acc = acc_ref[...]
        inner_s = jnp.sum(acc[0:1, :])
        outer_s = jnp.sum(acc[1:2, :])
        lane = jax.lax.broadcasted_iota(jnp.int32, out_ref.shape, 2)
        out_ref[...] = jnp.where(lane == 0, inner_s,
                                 jnp.where(lane == 1, outer_s, 0.0))


def _pick_th(Hpad, WL):
    """Largest slab height (multiple of 8 dividing Hpad) within ~32 MiB VMEM."""
    budget = 32 * 1024 * 1024
    for th in range(Hpad, 0, -8):
        if Hpad % th:
            continue
        # 6 double-buffered (th, WL) streams + 3 double-buffered 8-row halos
        need = 8 * WL * (6 * th + 24) + 32 * WL + 2048
        if need <= budget:
            return th, need
    # TODO(synk): for extremely large W*L a lane-axis grid split (with a
    # 1-column halo) would be needed; fall through with TH = 8.
    th = 8
    return th, 8 * WL * (6 * th + 24) + 32 * WL + 2048


def _lapl_loss_pallas(field3, ex, ey, ez, msel, kw2m, *, L):
    B, H, WL = field3.shape
    Hpad = _round_up(H, 8)
    if Hpad != H:
        # zero padding is exact: padded eps/mask rows are 0 so they neither
        # contribute to the sums nor corrupt real rows.
        field3 = jnp.pad(field3, ((0, 0), (0, Hpad - H), (0, 0)))
        pad2 = ((0, Hpad - H), (0, 0))
        ex, ey, ez, msel, kw2m = (jnp.pad(a, pad2)
                                  for a in (ex, ey, ez, msel, kw2m))

    th, need = _pick_th(Hpad, WL)
    nh = Hpad // th
    th8 = th // 8
    nb8 = Hpad // 8
    vmem_limit = int(min(48 * 1024 * 1024, max(32 * 1024 * 1024, 2 * need)))

    kernel = functools.partial(_lapl_loss_kernel, L=L, roll_mode=_roll_mode())
    const_spec = pl.BlockSpec((th, WL), lambda h, b: (h, 0))

    sums = pl.pallas_call(
        kernel,
        out_shape=jax.ShapeDtypeStruct((nh, 1, 128), jnp.float32),
        grid=(nh, B),
        in_specs=[
            pl.BlockSpec((1, th, WL), lambda h, b: (b, h, 0)),          # field slab
            pl.BlockSpec((1, 8, WL),                                     # prev halo
                         lambda h, b: (b, jnp.maximum(h * th8 - 1, 0), 0)),
            pl.BlockSpec((1, 8, WL),                                     # next halo
                         lambda h, b: (b, jnp.minimum((h + 1) * th8, nb8 - 1), 0)),
            const_spec,                                                  # ex
            const_spec,                                                  # ey
            const_spec,                                                  # ez
            pl.BlockSpec((8, WL),                                        # ez prev halo
                         lambda h, b: (jnp.maximum(h * th8 - 1, 0), 0)),
            const_spec,                                                  # msel
            const_spec,                                                  # kw2m
        ],
        out_specs=pl.BlockSpec((1, 1, 128), lambda h, b: (h, 0, 0)),
        scratch_shapes=[pltpu.VMEM((2, WL), jnp.float32)],
        compiler_params=pltpu.CompilerParams(
            dimension_semantics=("parallel", "arbitrary"),
            vmem_limit_bytes=vmem_limit),
    )(field3, field3, field3, ex, ey, ez, ez, msel, kw2m)

    return jnp.sum(sums[:, 0, 0]), jnp.sum(sums[:, 0, 1])


# ---------------------------------------------------------------------------
# Kernel 2: Debye kappa (k_w).  Points on lanes, charges tiled on an
# "arbitrary" axis; the charge reduction is a (1,TM)x(TM,TP) MXU dot.
# ---------------------------------------------------------------------------
def _kw_kernel(pts_ref, xq_ref, w_ref, out_ref, *, neg_inv_2s2, scale):
    m = pl.program_id(1)
    xq = xq_ref[...]                                 # (TM, 3)
    pts = pts_ref[...]                               # (3, TP)
    ddx = xq[:, 0:1] - pts[0:1, :]
    ddy = xq[:, 1:2] - pts[1:2, :]
    ddz = xq[:, 2:3] - pts[2:3, :]
    # Difference form on purpose: the |a|^2+|b|^2-2ab MXU form cancels
    # catastrophically at r ~ sigma = 1e-10, the only place exp() is nonzero.
    r2 = ddx * ddx + ddy * ddy + ddz * ddz
    e = jnp.exp(r2 * neg_inv_2s2)
    dens = jnp.dot(w_ref[...], e, preferred_element_type=jnp.float32)  # (1, TP)

    @pl.when(m == 0)
    def _():
        out_ref[...] = jnp.zeros_like(out_ref)

    out_ref[...] += dens

    @pl.when(m == pl.num_programs(1) - 1)
    def _():
        out_ref[...] = jnp.sqrt(out_ref[...] * scale)


def _kw_pallas(points, q, xq, *, eps_in, T=300.0):
    sigma = 1e-10
    P = int(points.shape[0])
    M = int(q.shape[0])
    if M <= 256:
        TM = _round_up(max(M, 1), 8)
        Mpad = TM
    else:
        TM = 256
        Mpad = _round_up(M, 256)
    if TM > 64:
        TP = 512                      # bound the (TM, TP) exp intermediate
    elif P >= 2048:
        TP = 2048
    else:
        TP = _round_up(max(P, 1), 128)
    Ppad = _round_up(max(P, 1), TP)

    pts_t = jnp.zeros((3, Ppad), jnp.float32).at[:, :P].set(points.T)
    xq_pad = jnp.zeros((Mpad, 3), jnp.float32).at[:M, :].set(xq)
    # z^2 hoisted out of the kernel; padded charges get weight 0.
    # TODO(synk): torch also drops 0 < |q| <~ 1e-8 via torch.isclose; here only
    # |q| < e/2 rounds to z = 0.
    w_pad = jnp.zeros((1, Mpad), jnp.float32).at[0, :M].set(
        jnp.round(q / _E) ** 2)

    coef = _E * _E / (eps_in * _EPS0 * _KB * T)
    gauss_norm = 1.0 / (2.0 * math.pi * sigma * sigma) ** 1.5
    kernel = functools.partial(_kw_kernel,
                               neg_inv_2s2=-1.0 / (2.0 * sigma * sigma),
                               scale=coef * gauss_norm)

    out = pl.pallas_call(
        kernel,
        out_shape=jax.ShapeDtypeStruct((1, Ppad), jnp.float32),
        grid=(Ppad // TP, Mpad // TM),
        in_specs=[pl.BlockSpec((3, TP), lambda p, m: (0, p)),
                  pl.BlockSpec((TM, 3), lambda p, m: (m, 0)),
                  pl.BlockSpec((1, TM), lambda p, m: (0, m))],
        out_specs=pl.BlockSpec((1, TP), lambda p, m: (0, p)),
        compiler_params=pltpu.CompilerParams(
            dimension_semantics=("parallel", "arbitrary")),
    )(pts_t, xq_pad, w_pad)
    return out[0, :P]


# ---------------------------------------------------------------------------
# Static per-call precompute (epsilon harmonic means with scalars folded in,
# ternary interior mask, kw^2 * outer).
# ---------------------------------------------------------------------------
def _precompute_constants(inner_mask, outer_mask, eps_in, eps_out, kw3d,
                          dx, dy, dz, inv_norm):
    inner = jnp.asarray(inner_mask, jnp.float32)
    outer = jnp.asarray(outer_mask, jnp.float32)
    H, W, L = inner.shape
    eps = inner * eps_in + (1.0 - inner) * eps_out
    hm = lambda a, b: 2.0 * a * b / (a + b)
    cx = inv_norm / (dx * dx)
    cy = inv_norm / (dy * dy)
    cz = inv_norm / (dz * dz)
    ex = jnp.zeros((H, W, L), jnp.float32).at[:, :, :L - 1].set(
        hm(eps[:, :, :-1], eps[:, :, 1:]) * cx)
    ey = jnp.zeros((H, W, L), jnp.float32).at[:, :W - 1, :].set(
        hm(eps[:, :-1, :], eps[:, 1:, :]) * cy)
    ez = jnp.zeros((H, W, L), jnp.float32).at[:H - 1, :, :].set(
        hm(eps[:-1, :, :], eps[1:, :, :]) * cz)
    interior = jnp.zeros((H, W, L), jnp.float32).at[1:-1, 1:-1, 1:-1].set(1.0)
    # Assumes inner_mask and outer_mask are disjoint (complements in practice).
    msel = (inner - outer) * interior
    kw2m = (kw3d * kw3d) * outer
    rs = lambda a: a.reshape(H, W * L)
    return rs(ex), rs(ey), rs(ez), rs(msel), rs(kw2m)


# ---------------------------------------------------------------------------
# Forward pass (== LaplacianLossInterface.forward)
# ---------------------------------------------------------------------------
def laplacian_loss_interface_forward(output, q, xq, *, cfg, lapl_weight,
                                     inner_mask, outer_mask, points,
                                     data_norm=1.0):
    g = cfg["globals"]
    dx = (g["xmax"] - g["xmin"]) / g["nnx"]
    dy = (g["ymax"] - g["ymin"]) / g["nny"]
    dz = (g["zmax"] - g["zmin"]) / g["nnz"]
    eps_in = float(g["epsilon_inside"])
    eps_out = float(g["epsilon_outside"])

    kw_flat = _kw_pallas(jnp.asarray(points, jnp.float32),
                         jnp.asarray(q, jnp.float32).reshape(-1),
                         jnp.asarray(xq, jnp.float32).reshape(-1, 3),
                         eps_in=eps_in)
    kw3d = kw_flat.reshape(g["nnx"], g["nny"], g["nnz"])

    ex, ey, ez, msel, kw2m = _precompute_constants(
        inner_mask, outer_mask, eps_in, eps_out, kw3d,
        dx, dy, dz, 1.0 / float(data_norm))

    field = jnp.asarray(output, jnp.float32)[:, 0]          # (B, H, W, L)
    B, H, W, L = field.shape
    field3 = field.reshape(B, H, W * L)                     # lane-dense layout

    inner_sum, outer_sum = _lapl_loss_pallas(
        field3, ex, ey, ez, msel, kw2m, L=L)

    n_in = float(np.count_nonzero(np.asarray(inner_mask, bool)))
    n_out = float(np.count_nonzero(np.asarray(outer_mask, bool)))
    loss = inner_sum / (B * n_in) + outer_sum / (B * n_out)
    return loss * lapl_weight


# ---------------------------------------------------------------------------
# Pure NumPy (float64) reference mirroring the PyTorch module, for validation.
# ---------------------------------------------------------------------------
def _reference_loss_np(output, q, xq, points, cfg, lapl_weight,
                       inner_mask, outer_mask, data_norm):
    g = cfg["globals"]
    dx = (g["xmax"] - g["xmin"]) / g["nnx"]
    dy = (g["ymax"] - g["ymin"]) / g["nny"]
    dz = (g["zmax"] - g["zmin"]) / g["nnz"]
    eps_in = float(g["epsilon_inside"])
    eps_out = float(g["epsilon_outside"])
    inner = np.asarray(inner_mask, bool)
    outer = np.asarray(outer_mask, bool)
    out = np.asarray(output, np.float64)[:, 0]
    f = out / data_norm
    eps = np.where(inner, eps_in, eps_out)
    hm = lambda a, b: 2.0 * a * b / (a + b)
    exh = hm(eps[:, :, :-1], eps[:, :, 1:])
    eyh = hm(eps[:, :-1, :], eps[:, 1:, :])
    ezh = hm(eps[:-1, :, :], eps[1:, :, :])
    fx = exh[None] * (f[:, :, :, 1:] - f[:, :, :, :-1]) / dx
    fy = eyh[None] * (f[:, :, 1:, :] - f[:, :, :-1, :]) / dy
    fz = ezh[None] * (f[:, 1:, :, :] - f[:, :-1, :, :]) / dz
    div = np.zeros_like(f)
    div[:, 1:-1, 1:-1, 1:-1] = (
        (fx[:, 1:-1, 1:-1, 1:] - fx[:, 1:-1, 1:-1, :-1]) / dx
        + (fy[:, 1:-1, 1:, 1:-1] - fy[:, 1:-1, :-1, 1:-1]) / dy
        + (fz[:, 1:, 1:-1, 1:-1] - fz[:, :-1, 1:-1, 1:-1]) / dz)

    qn = np.asarray(q, np.float64).reshape(-1)
    xqn = np.asarray(xq, np.float64).reshape(-1, 3)
    keep = ~np.isclose(qn, 0.0)
    qn, xqn = qn[keep], xqn[keep]
    pts = np.asarray(points, np.float64)
    if qn.size == 0:
        kw = np.zeros(pts.shape[0])
    else:
        sigma = 1e-10
        r = np.linalg.norm(pts[:, None, :] - xqn[None, :, :], axis=2)
        z = np.round(qn / _E)
        dens = np.sum((z ** 2)[None, :] * np.exp(-r ** 2 / (2.0 * sigma ** 2))
                      / (2.0 * np.pi * sigma ** 2) ** 1.5, axis=1)
        kw = np.sqrt(_E ** 2 / (eps_in * _EPS0 * _KB * 300.0) * dens)
    kw2 = kw.reshape(g["nnx"], g["nny"], g["nnz"]) ** 2

    lap_in = div[:, inner]
    lap_out = div[:, outer]
    tgt = kw2[outer][None, :] * out[:, outer]
    loss = np.mean(lap_in ** 2) + np.mean((lap_out - tgt) ** 2)
    return loss * lapl_weight


# ---------------------------------------------------------------------------
if __name__ == "__main__":
    N = 16   # nnx = nny = nnz (field spatial size)
    B = 2
    cfg = {"globals": {"xmin": 0.0, "xmax": 1.0,
                       "ymin": 0.0, "ymax": 1.0,
                       "zmin": 0.0, "zmax": 1.0,
                       "nnx": N, "nny": N, "nnz": N,
                       "epsilon_inside": 2.0, "epsilon_outside": 1.0}}

    # deterministic "parameters": grid points, inner/outer masks
    xs = np.linspace(0.0, 1.0, N, dtype=np.float32)
    X, Y, Z = np.meshgrid(xs, xs, xs, indexing="ij")
    points = np.stack([X.ravel(), Y.ravel(), Z.ravel()], axis=1)   # (N**3, 3)
    r2 = (X - 0.5) ** 2 + (Y - 0.5) ** 2 + (Z - 0.5) ** 2
    inner_mask = r2 < 0.3 ** 2                                     # sphere
    outer_mask = ~inner_mask

    key = jax.random.PRNGKey(0)
    k_out, k_xq = jax.random.split(key)
    output = jax.random.normal(k_out, (B, 1, N, N, N), dtype=jnp.float32)
    q = jnp.array([_E, -_E, 0.0], dtype=jnp.float32)    # +/-1 elementary charge
    xq = jax.random.uniform(k_xq, (3, 3), dtype=jnp.float32,
                            minval=0.2, maxval=0.8)
    data_norm = 2.0
    lapl_weight = 0.5

    loss = laplacian_loss_interface_forward(
        output, q, xq, cfg=cfg, lapl_weight=lapl_weight,
        inner_mask=inner_mask, outer_mask=outer_mask, points=points,
        data_norm=data_norm)
    loss = jax.block_until_ready(loss)

    ref = _reference_loss_np(np.asarray(output), np.asarray(q),
                             np.asarray(xq), points, cfg, lapl_weight,
                             inner_mask, outer_mask, data_norm)
    assert np.isfinite(float(loss))
    np.testing.assert_allclose(float(loss), float(ref), rtol=1e-3, atol=1e-8)
    print("KERNEL_OK")
</pallas_src>

<mosaic_0001>
module attributes {stable_mosaic.version = 11 : i64} {
  func.func @_kw_kernel(%arg0: i32, %arg1: i32, %arg2: memref<3x2048xf32, #tpu.memory_space<vmem>>, %arg3: memref<8x3xf32, #tpu.memory_space<vmem>>, %arg4: memref<1x8xf32, #tpu.memory_space<vmem>>, %arg5: memref<1x2048xf32, #tpu.memory_space<vmem>>) attributes {dimension_semantics = [#tpu.dimension_semantics<parallel>, #tpu.dimension_semantics<arbitrary>], iteration_bounds = array<i64: 2, 1>, scalar_prefetch = 0 : i64, scratch_operands = 0 : i64, tpu.core_type = #tpu.core_type<tc>, window_params = [{transform_indices = @transform_0, window_bounds = array<i64: 3, 2048>}, {transform_indices = @transform_1, window_bounds = array<i64: 8, 3>}, {transform_indices = @transform_2, window_bounds = array<i64: 1, 8>}, {transform_indices = @transform_3, window_bounds = array<i64: 1, 2048>}]} {
    %c0 = arith.constant 0 : index
    %c0_0 = arith.constant 0 : index
    %0 = vector.load %arg3[%c0, %c0_0] : memref<8x3xf32, #tpu.memory_space<vmem>>, vector<8x3xf32>
    %c0_1 = arith.constant 0 : index
    %c0_2 = arith.constant 0 : index
    %1 = vector.load %arg2[%c0_1, %c0_2] : memref<3x2048xf32, #tpu.memory_space<vmem>>, vector<3x2048xf32>
    %2 = vector.extract_strided_slice %0 {offsets = [0, 0], sizes = [8, 1], strides = [1, 1]} : vector<8x3xf32> to vector<8x1xf32>
    %3 = vector.extract_strided_slice %1 {offsets = [0, 0], sizes = [1, 2048], strides = [1, 1]} : vector<3x2048xf32> to vector<1x2048xf32>
    %4 = vector.broadcast %2 : vector<8x1xf32> to vector<8x2048xf32>
    %5 = vector.broadcast %3 : vector<1x2048xf32> to vector<8x2048xf32>
    %6 = arith.subf %4, %5 : vector<8x2048xf32>
    %7 = vector.extract_strided_slice %0 {offsets = [0, 1], sizes = [8, 1], strides = [1, 1]} : vector<8x3xf32> to vector<8x1xf32>
    %8 = vector.extract_strided_slice %1 {offsets = [1, 0], sizes = [1, 2048], strides = [1, 1]} : vector<3x2048xf32> to vector<1x2048xf32>
    %9 = vector.broadcast %7 : vector<8x1xf32> to vector<8x2048xf32>
    %10 = vector.broadcast %8 : vector<1x2048xf32> to vector<8x2048xf32>
    %11 = arith.subf %9, %10 : vector<8x2048xf32>
    %12 = vector.extract_strided_slice %0 {offsets = [0, 2], sizes = [8, 1], strides = [1, 1]} : vector<8x3xf32> to vector<8x1xf32>
    %13 = vector.extract_strided_slice %1 {offsets = [2, 0], sizes = [1, 2048], strides = [1, 1]} : vector<3x2048xf32> to vector<1x2048xf32>
    %14 = vector.broadcast %12 : vector<8x1xf32> to vector<8x2048xf32>
    %15 = vector.broadcast %13 : vector<1x2048xf32> to vector<8x2048xf32>
    %16 = arith.subf %14, %15 : vector<8x2048xf32>
    %17 = arith.mulf %6, %6 : vector<8x2048xf32>
    %18 = arith.mulf %11, %11 : vector<8x2048xf32>
    %19 = arith.addf %17, %18 : vector<8x2048xf32>
    %20 = arith.mulf %16, %16 : vector<8x2048xf32>
    %21 = arith.addf %19, %20 : vector<8x2048xf32>
    %cst = arith.constant -5.000000e+19 : f32
    %22 = vector.broadcast %cst : f32 to vector<8x2048xf32>
    %23 = arith.mulf %21, %22 : vector<8x2048xf32>
    %24 = math.exp %23 : vector<8x2048xf32>
    %c0_3 = arith.constant 0 : index
    %c0_4 = arith.constant 0 : index
    %25 = vector.load %arg4[%c0_3, %c0_4] : memref<1x8xf32, #tpu.memory_space<vmem>>, vector<1x8xf32>
    %cst_5 = arith.constant dense<0.000000e+00> : vector<1x2048xf32>
    %26 = tpu.matmul %25, %24, %cst_5 {dimension_numbers = #tpu.dot_dimension_numbers<[1], [0], [0], [1], [0, 0, 1, 1], [], []>} : vector<1x8xf32>, vector<8x2048xf32>, vector<1x2048xf32> -> vector<1x2048xf32>
    %c0_i32 = arith.constant 0 : i32
    %27 = arith.cmpi eq, %arg1, %c0_i32 : i32
    %28 = arith.extui %27 : i1 to i32
    %c0_i32_6 = arith.constant 0 : i32
    %29 = arith.cmpi ne, %28, %c0_i32_6 : i32
    scf.if %29 {
      %cst_13 = arith.constant 0.000000e+00 : f32
      %36 = vector.broadcast %cst_13 : f32 to vector<1x2048xf32>
      %c0_14 = arith.constant 0 : index
      %c0_15 = arith.constant 0 : index
      %37 = vector.load %arg5[%c0_14, %c0_15] : memref<1x2048xf32, #tpu.memory_space<vmem>>, vector<1x2048xf32>
      tpu.vector_store %arg5[%c0_14, %c0_15], %36 {strides = array<i32>} : memref<1x2048xf32, #tpu.memory_space<vmem>>, vector<1x2048xf32>,
    } else {
    }
    %c0_7 = arith.constant 0 : index
    %c0_8 = arith.constant 0 : index
    %30 = vector.load %arg5[%c0_7, %c0_8] : memref<1x2048xf32, #tpu.memory_space<vmem>>, vector<1x2048xf32>
    %31 = arith.addf %30, %26 : vector<1x2048xf32>
    %c0_9 = arith.constant 0 : index
    %c0_10 = arith.constant 0 : index
    %32 = vector.load %arg5[%c0_9, %c0_10] : memref<1x2048xf32, #tpu.memory_space<vmem>>, vector<1x2048xf32>
    tpu.vector_store %arg5[%c0_9, %c0_10], %31 {strides = array<i32>} : memref<1x2048xf32, #tpu.memory_space<vmem>>, vector<1x2048xf32>,
    %c0_i32_11 = arith.constant 0 : i32
    %33 = arith.cmpi eq, %arg1, %c0_i32_11 : i32
    %34 = arith.extui %33 : i1 to i32
    %c0_i32_12 = arith.constant 0 : i32
    %35 = arith.cmpi ne, %34, %c0_i32_12 : i32
    scf.if %35 {
      %c0_13 = arith.constant 0 : index
      %c0_14 = arith.constant 0 : index
      %36 = vector.load %arg5[%c0_13, %c0_14] : memref<1x2048xf32, #tpu.memory_space<vmem>>, vector<1x2048xf32>
      %cst_15 = arith.constant 2.22212109E+22 : f32
      %37 = vector.broadcast %cst_15 : f32 to vector<1x2048xf32>
      %38 = arith.mulf %36, %37 : vector<1x2048xf32>
      %39 = math.sqrt %38 : vector<1x2048xf32>
      %c0_16 = arith.constant 0 : index
      %c0_17 = arith.constant 0 : index
      %40 = vector.load %arg5[%c0_16, %c0_17] : memref<1x2048xf32, #tpu.memory_space<vmem>>, vector<1x2048xf32>
      tpu.vector_store %arg5[%c0_16, %c0_17], %39 {strides = array<i32>} : memref<1x2048xf32, #tpu.memory_space<vmem>>, vector<1x2048xf32>,
    } else {
    }
    return
  }
  func.func @transform_0(%arg0: i32, %arg1: i32) -> (i32, i32) {
    %c0_i32 = arith.constant 0 : i32
    %c0_i32_0 = arith.constant 0 : i32
    return %c0_i32, %arg0 : i32, i32
  }
  func.func @transform_1(%arg0: i32, %arg1: i32) -> (i32, i32) {
    %c0_i32 = arith.constant 0 : i32
    %c0_i32_0 = arith.constant 0 : i32
    return %arg1, %c0_i32 : i32, i32
  }
  func.func @transform_2(%arg0: i32, %arg1: i32) -> (i32, i32) {
    %c0_i32 = arith.constant 0 : i32
    %c0_i32_0 = arith.constant 0 : i32
    return %c0_i32, %arg1 : i32, i32
  }
  func.func @transform_3(%arg0: i32, %arg1: i32) -> (i32, i32) {
    %c0_i32 = arith.constant 0 : i32
    %c0_i32_0 = arith.constant 0 : i32
    return %c0_i32, %arg0 : i32, i32
  }
}

</mosaic_0001>

<bundles_post_ra>
// kernel: tpu_custom_call.1
= control target key start
LH: loop header
LB: loop body
LE: loop exit
PB: predicated region body
PF: predicated region fallthrough
CT: control target
= control target key end

     0   :  { %8 = vsyncpa [#allocation3], 0  ;;  %s1754_s0 = inlined_call_operand.hbm [shape: f32[3,4096], index: 0, kind: input, shape index: {}]   ;;  %s1755_s1 = inlined_call_operand.vmem [shape: f32[8,3], index: 1, kind: input, shape index: {}]   ;;  %s1756_s2 = inlined_call_operand.vmem [shape: f32[1,8], index: 2, kind: input, shape index: {}]   ;;  %s1757_s3 = inlined_call_operand.hbm [shape: f32[1,4096], index: 3, kind: output, shape index: {}]  }
   0x1   :  { %10 = vsyncpa [#allocation3 + $0x1], 0 }
   0x2   :  { %11 = vsyncpa [#allocation4], 0 }
   0x3   :  { %13 = vsyncpa [#allocation4 + $0x1], 0  ;;  %s1404_s12 = smov 0   ;;  %s1406_s13 = smov 0  }
   0x4   :  { %s1408_s14 = smov 0   ;;  %s1410_s15 = smov 0  }
   0x5   :  { %s1412_s16 = smov 0   ;;  %s1414_s17 = smov 0  }
   0x6 LB: > { %s1128_s18 = sadd.s32 4294967295, %s1379_s17   ;;  %s1129_s19 = sadd.s32 4294967294, %s1379_s17   ;;  %s1379_s17 = sphi %s1414_s17, %s19_s17   ;;  %s1375_s16 = sphi %s1412_s16, %s1766_s16   ;;  %s1371_s15 = sphi %s1410_s15, %s1765_s15   ;;  %s1367_s14 = sphi %s1408_s14, %s1764_s14   ;;  %s1363_s13 = sphi %s1406_s13, %s1763_s13   ;;  %s1359_s12 = sphi %s1404_s12, %s1762_s12  }
   0x7   : > { %s31_s20 = sadd.s32 1, %s1375_s16  ;;  %s38_s21 = sadd.s32 1, %s1367_s14 }
   0x8   : > { %p33_p0 = scmp.ge.s32.totalorder %s31_s20, 2  ;;  %p45_p1 = scmp.ne.s32.totalorder %s1367_s14, %s1363_s13 }
   0x9   : > { %p46_p2 = scmp.eq.s32.totalorder %s1379_s17, 0  ;;  %p51_p3 = scmp.ne.s32.totalorder %s1363_s13, %s1359_s12 }
   0xa   : > { %s1768_s20 = smov (%p33_p0, %s31_s20), 0  ;;  %p52_p5 = scmp.eq.s32.totalorder %s1128_s18, 0 }
   0xb   : > { %p1445_p4 = por %p46_p2, %p45_p1  ;;  %s35_s23 = ssub.s32 %s1375_s16, %s1768_s20 }
   0xc   : > { %p127_p6 = scmp.eq.s32.totalorder %s1128_s18, 1  ;;  %p36_p7 = scmp.eq.s32.totalorder %s35_s23, 0 }
   0xd   : > { %p1451_p8 = por %p52_p5, %p51_p3  ;;  %p133_p10 = scmp.eq.s32.totalorder %s1129_s19, 1 }
   0xe   : > { %p1455_p9 = por %p127_p6, %p45_p1  ;;  %p1133_p12 = scmp.ge.s32.totalorder %s1379_s17, 2 }
   0xf   : > { %s1460_s26 = scalar_select %p36_p7, %s1367_s14, %s38_s21  }
  0x10   : > { %p1462_p11 = por %p133_p10, %p51_p3  ;;  %p1173_p13 = scmp.lt.s32.totalorder %s1379_s17, 2 }
  0x11   : > { %s166_s28 = sand.u32 1, %s1367_s14   ;;  %s1160_s30 = sshll.u32 %s1375_s16, 6 }
  0x12   : > { %s1134_s29 = sshll.u32 %s166_s28, 6  ;;  %s175_s6 = scalar_lea.hbm %s1754_s0, %s1160_s30 }
  0x13   : > { %s170_s7 = scalar_lea.vmem [#allocation2], %s1134_s29  ;;  %s177_s9 = sshll.u32 %s175_s6, 4  ;;  %s178_s9 = int_to_ptr.hbm [resolvable:$true] %s177_s9 }
  0x14   : > { %s179_s8 = sshll.u32 %s170_s7, 4  ;;  %p1166_p0 = pnand %p1173_p13, %p1445_p4  ;;  %s180_s8 = int_to_ptr.vmem [resolvable:$true] %s179_s8 }
  0x15   : > { %p1137_p1 = scmp.ge.s32.totalorder %s1379_s17, 1  ;;  %p184_p2 = scmp.lt.s32.totalorder %s1379_s17, 3 }
  0x16   : > { %s167_s10 = scalar_lea.sflag [#allocation3], %s166_s28 }
  0x17   : > { %1168 = dma.hbm_to_vmem [thread:$0]  (!%p1166_p0), %s178_s9, 1024, %s180_s8, %s167_s10  }
  0x18   : > { %p185_p3 = pnand %p1137_p1, %p184_p2 }
  0x19   : > { %s1478_s11 = sand.u32 (!%p185_p3), 1, %s1363_s13  }
  0x1a   : > { %188 = sbr.rel (%p185_p3) target bundleno = 377 (0x179), region = 32  ;;  %s1138_s18 = sshll.u32 (!%p185_p3), %s1478_s11, 6 }
  0x1b   : > { %s191_s19 = scalar_lea.sflag (!%p185_p3), [#allocation3], %s1478_s11  ;;  %s1482_s21 = scalar_lea.vmem (!%p185_p3), [#allocation2], %s1138_s18 }
  0x1f   : > { %1350 = dma.done.wait (%p1451_p8), %s191_s19, 1024  }
  0x20   : > { %1352 = vsyncadd (%p1451_p8), %s191_s19, 4294966272  ;;  %v1381_v0 = vmov 0   ;;  %v1382_v1 = vmov 2   ;;  %v234_v2 = vld [vmem:[%s1755_s1] sm:$0xff]  ;;  %v1383_v3 = vmov 1   ;;  %vm585_vm0 = vcmask 64512  }
  0x21   : > { %1227 = vset.pattern.permute.xlu0 %v1381_v0  ;;  %1229 = vset.pattern.permute.xlu1 %v1382_v1  ;;  %v235_v4 = vld [vmem:[%s1482_s21] sm:$0x77]  ;;  %v236_v7 = vld [vmem:[%s1482_s21 + $0x8] sm:$0x77]  ;;  %v237_v8 = vld [vmem:[%s1482_s21 + $0x10] sm:$0x77] }
  0x22   : > { %245 = vperm.xlu0 %1227, %v234_v2   ;;  %389 = vperm.xlu1 %1229, %v234_v2   ;;  %v256_v5 = vperm.slane %v235_v4, 0  ;;  %v257_v6 = vperm.slane %v235_v4, 4  ;;  %v238_v9 = vld [vmem:[%s1482_s21 + $0x18] sm:$0x77]  ;;  %v258_v10 = vperm.slane %v236_v7, 0  ;;  %v259_v11 = vperm.slane %v236_v7, 4 }
  0x23   : > { %v1496_v12 = vld [vmem:[%s1482_s21 + $0x20] sm:$0x77]  ;;  %v260_v15 = vperm.slane %v237_v8, 0  ;;  %v261_v16 = vperm.slane %v237_v8, 4  ;;  %v262_v17 = vperm.slane %v238_v9, 0  ;;  %v263_v18 = vperm.slane %v238_v9, 4 }
  0x24   : > { %v1498_v13 = vperm.slane %v256_v5, 0  ;;  %v1500_v14 = vperm.slane %v257_v6, 0  ;;  %v324_v19 = vperm.slane %v235_v4, 1  ;;  %v325_v20 = vperm.slane %v235_v4, 5  ;;  %v1528_v47 = vld [vmem:[%s1482_s21 + $0x28] sm:$0x77] }
  0x25   : > { %v326_v21 = vperm.slane %v236_v7, 1  ;;  %v264_v22 = vperm.slane %v1496_v12, 0  ;;  %v392_v23 = vperm.slane %v235_v4, 2  ;;  %v393_v24 = vperm.slane %v235_v4, 6  ;;  %v1531_v52 = vld [vmem:[%s1482_s21 + $0x30] sm:$0x77] }
  0x26   : > { %v1503_v25 = vperm.slane %v258_v10, 0  ;;  %v1505_v26 = vperm.slane %v259_v11, 0  ;;  %v394_v27 = vperm.slane %v236_v7, 2  ;;  %v327_v28 = vperm.slane %v236_v7, 5  ;;  %s1139_s29 = sshll.u32 %s1478_s11, 4  ;;  %s1157_s4 = sshll.u32 %s1371_s15, 4 }
  0x27   : > { %v395_v29 = vperm.slane %v236_v7, 6  ;;  %v328_v30 = vperm.slane %v237_v8, 1  ;;  %v1507_v31 = vperm.slane %v260_v15, 0  ;;  %v1509_v32 = vperm.slane %v261_v16, 0  ;;  %s224_s30 = scalar_lea.vmem [#allocation5], %s1139_s29  ;;  %s1018_s7 = scalar_lea.hbm %s1757_s3, %s1157_s4 }
  0x28   : > { %v1511_v33 = vperm.slane %v262_v17, 0  ;;  %v1513_v34 = vperm.slane %v263_v18, 0  ;;  %v1515_v35 = vperm.slane %v324_v19, 1  ;;  %v1517_v36 = vperm.slane %v325_v20, 1  ;;  %s1020_s8 = sshll.u32 %s224_s30, 4  ;;  %s1022_s9 = sshll.u32 %s1018_s7, 4  ;;  %s1021_s8 = int_to_ptr.vmem [resolvable:$true] %s1020_s8  ;;  %s1023_s9 = int_to_ptr.hbm [resolvable:$true] %s1022_s9 }
  0x29   : > { %v1519_v37 = vperm.slane %v326_v21, 1  ;;  %v1521_v38 = vperm.slane %v264_v22, 0  ;;  %v424_v39 = vperm.slane %v392_v23, 2  ;;  %v425_v40 = vperm.slane %v393_v24, 2  ;;  %s1008_s15 = scalar_lea.sflag [#allocation4], %s1478_s11  ;;  %s1311_s10 = sshra.s32 %s1023_s9, 4  ;;  %s1312_s10 = int_to_ptr.hbm [resolvable:$true] %s1311_s10 }
  0x2a   : > { %1228 = vset.pattern.permute.xlu0 %v1383_v3  ;;  %v329_v41 = vperm.slane %v237_v8, 5  ;;  %v330_v42 = vperm.slane %v238_v9, 1  ;;  %v426_v43 = vperm.slane %v394_v27, 2  ;;  %v1523_v44 = vperm.slane %v327_v28, 1  ;;  %s1313_s18 = scalar_lea.hbm %s1312_s10, 16  ;;  %s1317_s22 = scalar_lea.hbm %s1757_s3, 32 }
  0x2b   : > { %321 = vperm.xlu0 %1228, %v234_v2   ;;  %v427_v45 = vperm.slane %v395_v29, 2  ;;  %v1525_v46 = vperm.slane %v328_v30, 1  ;;  %v396_v48 = vperm.slane %v237_v8, 2  ;;  %v397_v49 = vperm.slane %v237_v8, 6  ;;  %p1314_p4 = scmp.ne.s32.totalorder %s1312_s10, %s1313_s18  ;;  %p1318_p7 = scmp.lt.s32.totalorder %s1312_s10, %s1757_s3 }
  0x2c   : > { %v398_v50 = vperm.slane %v238_v9, 2  ;;  %v331_v51 = vperm.slane %v238_v9, 5  ;;  %v399_v53 = vperm.slane %v238_v9, 6  ;;  %v332_v54 = vperm.slane %v1496_v12, 1  ;;  %v1551_v9 = vld [vmem:[%s1482_s21 + $0x38] sm:$0x77]  ;;  %p1319_p8 = scmp.lt.s32.totalorder %s1317_s22, %s1313_s18 }
  0x2d   : > { %v400_v55 = vperm.slane %v1496_v12, 2  ;;  %v265_v56 = vperm.slane %v1496_v12, 4  ;;  %v1536_v57 = vperm.slane %v329_v41, 1  ;;  %v1538_v58 = vperm.slane %v330_v42, 1  ;;  %p1315_p5 = pnand %p1314_p4, %p1455_p9 }
  0x2e   : > { %v266_v59 = vperm.slane %v1528_v47, 0  ;;  %v267_v60 = vperm.slane %v1528_v47, 4  ;;  %v333_v61 = vperm.slane %v1496_v12, 5  ;;  %v401_v62 = vperm.slane %v1496_v12, 6  ;;  %p1320_p10 = por %p1319_p8, %p1318_p7 }
  0x2f   : > { %v268_v63 = vperm.slane %v1531_v52, 0  ;;  %v269_v0 = vperm.slane %v1531_v52, 4  ;;  %v429_v2 = vperm.slane %v397_v49, 2  ;;  %v430_v3 = vperm.slane %v398_v50, 2  ;;  %p1316_p6 = pneg %p1315_p5 }
  0x30   : > { %v1546_v4 = vperm.slane %v331_v51, 1  ;;  %v431_v5 = vperm.slane %v399_v53, 2  ;;  %v1548_v6 = vperm.slane %v332_v54, 1  ;;  %v432_v7 = vperm.slane %v400_v55, 2 }
  0x31   : > { %v297_v8 = vperm.slane %v265_v56, 0  ;;  %v1553_v10 = vperm.slane %v266_v59, 0  ;;  %v334_v11 = vperm.slane %v1528_v47, 1  ;;  %v1556_v12 = vperm.slane %v267_v60, 0  ;;  %p1321_p13 = pnand %p1320_p10, %p1316_p6 }
  0x32   : > { %v270_v15 = vperm.slane %v1551_v9, 0  ;;  %v1559_v16 = vperm.slane %v333_v61, 1  ;;  %v433_v17 = vperm.slane %v401_v62, 2  ;;  %v1561_v18 = vperm.slane %v268_v63, 0 }
  0x33   : > { %1230 = vset.pattern.permute.xlu0 %v1382_v1  ;;  %v428_v1 = vperm.slane %v396_v48, 2  ;;  %v1563_v19 = vperm.slane %v269_v0, 0  ;;  %v1569_v22 = vperm.slane %v334_v11, 1  ;;  %v402_v23 = vperm.slane %v1528_v47, 2 }
  0x34   : > { %v335_v24 = vperm.slane %v1528_v47, 5  ;;  %v1573_v27 = vperm.slane %v270_v15, 0  ;;  %vm949_vm1 = vcmask 1042434   ;;  %vm953_vm2 = vcmask 1044484  }
  0x35   : > { %vm947_vm3 = vcmask 1040384   ;;  %vm951_vm4 = vcmask 1041408   ;;  %vm955_vm5 = vcmask 1046534   ;;  %vm957_vm6 = vcmask 1045508  }
  0x36   : > { %vm959_vm7 = vcmask 1043456  }
  0x94   : > { %v1565_v20 = vpop.permute.xlu0 %245  ;;  %v1567_v21 = vpop.permute.xlu1 %389 }
  0x95   : > { %v304_v28 = vsub.f32 %v1565_v20, %v1498_v13  ;;  %v440_v29 = vsub.f32 %v1567_v21, %v424_v39  ;;  %v305_v30 = vsub.f32 %v1565_v20, %v1500_v14  ;;  %v441_v41 = vsub.f32 %v1567_v21, %v425_v40 }
  0x96   : > { %v306_v42 = vsub.f32 %v1565_v20, %v1503_v25  ;;  %v442_v48 = vsub.f32 %v1567_v21, %v426_v43  ;;  %v307_v49 = vsub.f32 %v1565_v20, %v1505_v26  ;;  %v443_v50 = vsub.f32 %v1567_v21, %v427_v45 }
  0x97   : > { %v456_v51 = vmul.f32 %v304_v28, %v304_v28  ;;  %v504_v53 = vmul.f32 %v440_v29, %v440_v29  ;;  %v457_v13 = vmul.f32 %v305_v30, %v305_v30  ;;  %v505_v54 = vmul.f32 %v441_v41, %v441_v41 }
  0x98   : > { %v458_v39 = vmul.f32 %v306_v42, %v306_v42  ;;  %v506_v55 = vmul.f32 %v442_v48, %v442_v48  ;;  %v459_v56 = vmul.f32 %v307_v49, %v307_v49  ;;  %v507_v14 = vmul.f32 %v443_v50, %v443_v50 }
  0x99   : > { %v308_v40 = vsub.f32 %v1565_v20, %v1507_v31  ;;  %v444_v25 = vsub.f32 %v1567_v21, %v428_v1  ;;  %v309_v43 = vsub.f32 %v1565_v20, %v1509_v32  ;;  %v445_v26 = vsub.f32 %v1567_v21, %v429_v2 }
  0x9a   : > { %v310_v45 = vsub.f32 %v1565_v20, %v1511_v33  ;;  %v446_v59 = vsub.f32 %v1567_v21, %v430_v3  ;;  %v311_v60 = vsub.f32 %v1565_v20, %v1513_v34  ;;  %v447_v61 = vsub.f32 %v1567_v21, %v431_v5 }
  0x9b   : > { %v460_v62 = vmul.f32 %v308_v40, %v308_v40  ;;  %v508_v63 = vmul.f32 %v444_v25, %v444_v25  ;;  %v461_v31 = vmul.f32 %v309_v43, %v309_v43  ;;  %v509_v0 = vmul.f32 %v445_v26, %v445_v26 }
  0x9c   : > { %v462_v1 = vmul.f32 %v310_v45, %v310_v45  ;;  %v510_v11 = vmul.f32 %v446_v59, %v446_v59  ;;  %v463_v15 = vmul.f32 %v311_v60, %v311_v60  ;;  %v511_v32 = vmul.f32 %v447_v61, %v447_v61 }
  0x9d   : > { %v1599_v28 = vpop.permute.xlu0 %321  ;;  %v312_v33 = vsub.f32 %v1565_v20, %v1521_v38  ;;  %v448_v2 = vsub.f32 %v1567_v21, %v432_v7  ;;  %v313_v3 = vsub.f32 %v1565_v20, %v297_v8  ;;  %v449_v34 = vsub.f32 %v1567_v21, %v433_v17 }
  0x9e   : > { %v372_v5 = vsub.f32 %v1599_v28, %v1515_v35  ;;  %v373_v29 = vsub.f32 %v1599_v28, %v1517_v36  ;;  %v374_v30 = vsub.f32 %v1599_v28, %v1519_v37  ;;  %v375_v41 = vsub.f32 %v1599_v28, %v1523_v44 }
  0x9f   : > { %v376_v38 = vsub.f32 %v1599_v28, %v1525_v46  ;;  %v377_v7 = vsub.f32 %v1599_v28, %v1536_v57  ;;  %v378_v8 = vsub.f32 %v1599_v28, %v1538_v58  ;;  %v379_v35 = vsub.f32 %v1599_v28, %v1546_v4 }
  0xa0   : > { %v472_v17 = vmul.f32 %v372_v5, %v372_v5  ;;  %v473_v36 = vmul.f32 %v373_v29, %v373_v29  ;;  %v474_v42 = vmul.f32 %v374_v30, %v374_v30  ;;  %v475_v48 = vmul.f32 %v375_v41, %v375_v41 }
  0xa1   : > { %v476_v37 = vmul.f32 %v376_v38, %v376_v38  ;;  %v477_v49 = vmul.f32 %v377_v7, %v377_v7  ;;  %v478_v50 = vmul.f32 %v378_v8, %v378_v8  ;;  %v479_v44 = vmul.f32 %v379_v35, %v379_v35 }
  0xa2   : > { %v488_v40 = vadd.f32 %v472_v17, %v456_v51  ;;  %v489_v25 = vadd.f32 %v473_v36, %v457_v13  ;;  %v490_v46 = vadd.f32 %v474_v42, %v458_v39  ;;  %v491_v43 = vadd.f32 %v475_v48, %v459_v56 }
  0xa3   : > { %v492_v26 = vadd.f32 %v476_v37, %v460_v62  ;;  %v493_v57 = vadd.f32 %v477_v49, %v461_v31  ;;  %v494_v45 = vadd.f32 %v478_v50, %v462_v1  ;;  %v495_v59 = vadd.f32 %v479_v44, %v463_v15 }
  0xa4   : > { %v520_v58 = vadd.f32 %v504_v53, %v488_v40  ;;  %v521_v60 = vadd.f32 %v505_v54, %v489_v25  ;;  %v522_v61 = vadd.f32 %v506_v55, %v490_v46  ;;  %v523_v4 = vadd.f32 %v507_v14, %v491_v43 }
  0xa5   : > { %v524_v5 = vadd.f32 %v508_v63, %v492_v26  ;;  %v525_v29 = vadd.f32 %v509_v0, %v493_v57  ;;  %v526_v30 = vadd.f32 %v510_v11, %v494_v45  ;;  %v527_v41 = vadd.f32 %v511_v32, %v495_v59 }
  0xa6   : > { %v536_v38 = vmul.f32 -5e+19, %v520_v58  ;;  %v537_v7 = vmul.f32 -5e+19, %v521_v60  ;;  %v538_v8 = vmul.f32 -5e+19, %v522_v61  ;;  %v380_v51 = vsub.f32 %v1599_v28, %v1548_v6 }
  0xa7   : > { %v539_v13 = vmul.f32 -5e+19, %v523_v4  ;;  %v540_v39 = vmul.f32 -5e+19, %v524_v5  ;;  %v541_v56 = vmul.f32 -5e+19, %v525_v29  ;;  %v464_v62 = vmul.f32 %v312_v33, %v312_v33 }
  0xa8   : > { %v552_v31 = vmul.f32 1.442695, %v536_v38  ;;  %v554_v53 = vmul.f32 1.442695, %v537_v7  ;;  %v556_v54 = vmul.f32 1.442695, %v538_v8  ;;  %v480_v55 = vmul.f32 %v380_v51, %v380_v51 }
  0xa9   : > { %v558_v14 = vmul.f32 1.442695, %v539_v13  ;;  %v560_v63 = vmul.f32 1.442695, %v540_v39  ;;  %v562_v0 = vmul.f32 1.442695, %v541_v56  ;;  %v512_v1 = vmul.f32 %v448_v2, %v448_v2 }
  0xaa   : > { %1231 = vpow2.f32 %v552_v31  ;;  %v542_v11 = vmul.f32 -5e+19, %v526_v30  ;;  %v543_v15 = vmul.f32 -5e+19, %v527_v41  ;;  %v496_v32 = vadd.f32 %v480_v55, %v464_v62 }
  0xab   : > { %1233 = vpow2.f32 %v554_v53  ;;  %v381_v6 = vsub.f32 %v1599_v28, %v1559_v16  ;;  %v465_v35 = vmul.f32 %v313_v3, %v313_v3  ;;  %v513_v17 = vmul.f32 %v449_v34, %v449_v34  ;;  %v1637_v3 = vld [vmem:[%s1756_s2] sm:$0x1] }
  0xac   : > { %1235 = vpow2.f32 %v556_v54  ;;  %v564_v33 = vmul.f32 1.442695, %v542_v11  ;;  %v566_v36 = vmul.f32 1.442695, %v543_v15  ;;  %v528_v42 = vadd.f32 %v512_v1, %v496_v32 }
  0xad   : > { %1237 = vpow2.f32 %v558_v14  ;;  %v481_v48 = vmul.f32 %v381_v6, %v381_v6  ;;  %v314_v37 = vsub.f32 %v1565_v20, %v1553_v10  ;;  %v382_v2 = vsub.f32 %v1599_v28, %v1569_v22 }
  0xae   : > { %1239 = vpow2.f32 %v560_v63  ;;  %v544_v49 = vmul.f32 -5e+19, %v528_v42  ;;  %v434_v50 = vperm.slane %v402_v23, 2  ;;  %v315_v16 = vsub.f32 %v1565_v20, %v1556_v12 }
  0xaf   : > { %1241 = vpow2.f32 %v562_v0  ;;  %v497_v34 = vadd.f32 %v481_v48, %v465_v35  ;;  %v466_v44 = vmul.f32 %v314_v37, %v314_v37  ;;  %v482_v10 = vmul.f32 %v382_v2, %v382_v2 }
  0xb0   : > { %v1232_v40 = vpop.eup %1231  ;;  %1243 = vpow2.f32 %v564_v33  ;;  %v568_v22 = vmul.f32 1.442695, %v544_v49  ;;  %v450_v25 = vsub.f32 %v1567_v21, %v434_v50  ;;  %v367_v23 = vperm.slane %v335_v24, 1 }
  0xb1   : > { %v1234_v46 = vpop.eup %1233  ;;  %604 = vmatpush.msra.mxu0 %v1232_v40  ;;  %1245 = vpow2.f32 %v566_v36  ;;  %v529_v12 = vadd.f32 %v513_v17, %v497_v34  ;;  %v498_v43 = vadd.f32 %v482_v10, %v466_v44  ;;  %v403_v26 = vperm.slane %v1528_v47, 6 }
  0xb2   : > { %v1236_v57 = vpop.eup %1235  ;;  %624 = vmatpush.msra.mxu1 %v1234_v46  ;;  %1140 = vmatmul.msk.f32.vlgmr.msra.gmra.mxu0 %vm585_vm0, %v1637_v3  ;;  %1247 = vpow2.f32 %v568_v22  ;;  %v514_v45 = vmul.f32 %v450_v25, %v450_v25  ;;  %v383_v59 = vsub.f32 %v1599_v28, %v367_v23  ;;  %v467_v58 = vmul.f32 %v315_v16, %v315_v16 }
  0xb3   : > { %v1238_v60 = vpop.eup %1237  ;;  %644 = vmatpush.msra.mxu2 %v1236_v57  ;;  %1141 = vmatmul.msk.f32.vlgmr.msra.gmra.mxu1 %vm585_vm0, %v1637_v3  ;;  %v545_v24 = vmul.f32 -5e+19, %v529_v12  ;;  %v435_v61 = vperm.slane %v403_v26, 2  ;;  %v316_v47 = vsub.f32 %v1565_v20, %v1561_v18  ;;  %v336_v4 = vperm.slane %v1531_v52, 1 }
  0xb4   : > { %v1240_v5 = vpop.eup %1239  ;;  %664 = vmatpush.msra.mxu3 %v1238_v60  ;;  %1142 = vmatmul.msk.f32.vlgmr.msra.gmra.mxu2 %vm585_vm0, %v1637_v3  ;;  %v530_v29 = vadd.f32 %v514_v45, %v498_v43  ;;  %v483_v30 = vmul.f32 %v383_v59, %v383_v59  ;;  %v404_v41 = vperm.slane %v1531_v52, 2  ;;  %v317_v38 = vsub.f32 %v1565_v20, %v1563_v19 }
  0xb5   : > { %v1242_v7 = vpop.eup %1241  ;;  %1143 = vmatmul.msk.f32.vlgmr.msra.gmra.mxu3 %vm585_vm0, %v1637_v3  ;;  %684 = vmatpush.msrb.mxu0 %v1240_v5  ;;  %v570_v18 = vmul.f32 1.442695, %v545_v24  ;;  %v451_v8 = vsub.f32 %v1567_v21, %v435_v61  ;;  %v368_v51 = vperm.slane %v336_v4, 1  ;;  %v468_v13 = vmul.f32 %v316_v47, %v316_v47 }
  0xb6   : > { %v1244_v39 = vpop.eup %1243  ;;  %704 = vmatpush.msrb.mxu1 %v1242_v7  ;;  %v546_v56 = vmul.f32 -5e+19, %v530_v29  ;;  %v499_v62 = vadd.f32 %v483_v30, %v467_v58  ;;  %v436_v31 = vperm.slane %v404_v41, 2  ;;  %v337_v53 = vperm.slane %v1531_v52, 5 }
  0xb7   : > { %v1246_v54 = vpop.eup %1245  ;;  %724 = vmatpush.msrb.mxu2 %v1244_v39  ;;  %1249 = vpow2.f32 %v570_v18  ;;  %v515_v19 = vmul.f32 %v451_v8, %v451_v8  ;;  %v384_v55 = vsub.f32 %v1599_v28, %v368_v51  ;;  %v405_v14 = vperm.slane %v1531_v52, 6 }
  0xb8   : > { %v1248_v63 = vpop.eup %1247  ;;  %744 = vmatpush.msrb.mxu3 %v1246_v54  ;;  %v572_v0 = vmul.f32 1.442695, %v546_v56  ;;  %v452_v1 = vsub.f32 %v1567_v21, %v436_v31  ;;  %v369_v11 = vperm.slane %v337_v53, 1  ;;  %v469_v15 = vmul.f32 %v317_v38, %v317_v38 }
  0xb9   : > { %764 = vmatpush.msra.mxu0 %v1248_v63  ;;  %v531_v32 = vadd.f32 %v515_v19, %v499_v62  ;;  %v484_v6 = vmul.f32 %v384_v55, %v384_v55  ;;  %v437_v35 = vperm.slane %v405_v14, 2  ;;  %v318_v17 = vsub.f32 %v1565_v20, %v1573_v27 }
  0xba   : > { %1251 = vpow2.f32 %v572_v0  ;;  %1144 = vmatmul.msk.f32.vlgmr.msrb.gmra.mxu0 %vm585_vm0, %v1637_v3  ;;  %v516_v33 = vmul.f32 %v452_v1, %v452_v1  ;;  %v385_v52 = vsub.f32 %v1599_v28, %v369_v11  ;;  %v338_v36 = vperm.slane %v1551_v9, 1 }
  0xbb   : > { %v547_v42 = vmul.f32 -5e+19, %v531_v32  ;;  %1145 = vmatmul.msk.f32.vlgmr.msrb.gmra.mxu1 %vm585_vm0, %v1637_v3  ;;  %v500_v48 = vadd.f32 %v484_v6, %v468_v13  ;;  %v453_v37 = vsub.f32 %v1567_v21, %v437_v35  ;;  %v406_v2 = vperm.slane %v1551_v9, 2 }
  0xbc   : > { %1146 = vmatmul.msk.f32.vlgmr.msrb.gmra.mxu2 %vm585_vm0, %v1637_v3  ;;  %v485_v27 = vmul.f32 %v385_v52, %v385_v52  ;;  %v370_v49 = vperm.slane %v338_v36, 1  ;;  %v470_v50 = vmul.f32 %v318_v17, %v318_v17  ;;  %v271_v16 = vperm.slane %v1551_v9, 4 }
  0xbd   : > { %v1250_v34 = vpop.eup %1249  ;;  %v574_v44 = vmul.f32 1.442695, %v547_v42  ;;  %1147 = vmatmul.msk.f32.vlgmr.msrb.gmra.mxu3 %vm585_vm0, %v1637_v3  ;;  %v532_v10 = vadd.f32 %v516_v33, %v500_v48  ;;  %v517_v40 = vmul.f32 %v453_v37, %v453_v37  ;;  %v438_v22 = vperm.slane %v406_v2, 2 }
  0xbe   : > { %784 = vmatpush.msra.mxu1 %v1250_v34  ;;  %v501_v25 = vadd.f32 %v485_v27, %v469_v15  ;;  %v386_v23 = vsub.f32 %v1599_v28, %v370_v49  ;;  %v303_v46 = vperm.slane %v271_v16, 0  ;;  %v339_v12 = vperm.slane %v1551_v9, 5 }
  0xbf   : > { %1253 = vpow2.f32 %v574_v44  ;;  %v548_v43 = vmul.f32 -5e+19, %v532_v10  ;;  %v454_v26 = vsub.f32 %v1567_v21, %v438_v22  ;;  %v407_v57 = vperm.slane %v1551_v9, 6 }
  0xc0   : > { %v1252_v45 = vpop.eup %1251  ;;  %v533_v59 = vadd.f32 %v517_v40, %v501_v25  ;;  %v486_v58 = vmul.f32 %v386_v23, %v386_v23  ;;  %v319_v60 = vsub.f32 %v1565_v20, %v303_v46  ;;  %v371_v24 = vperm.slane %v339_v12, 1 }
  0xc1   : > { %804 = vmatpush.msra.mxu2 %v1252_v45  ;;  %v576_v61 = vmul.f32 1.442695, %v548_v43  ;;  %v518_v47 = vmul.f32 %v454_v26, %v454_v26  ;;  %v439_v4 = vperm.slane %v407_v57, 2 }
  0xc2   : > { %v549_v5 = vmul.f32 -5e+19, %v533_v59  ;;  %v502_v29 = vadd.f32 %v486_v58, %v470_v50  ;;  %v387_v30 = vsub.f32 %v1599_v28, %v371_v24  ;;  %1148 = vmatmul.msk.f32.vlgmr.msra.gmra.mxu0 %vm585_vm0, %v1637_v3  ;;  %v471_v38 = vmul.f32 %v319_v60, %v319_v60 }
  0xc3   : > { %1255 = vpow2.f32 %v576_v61  ;;  %v455_v9 = vsub.f32 %v1567_v21, %v439_v4  ;;  %1149 = vmatmul.msk.f32.vlgmr.msra.gmra.mxu1 %vm585_vm0, %v1637_v3 }
  0xc4   : > { %v578_v41 = vmul.f32 1.442695, %v549_v5  ;;  %v534_v20 = vadd.f32 %v518_v47, %v502_v29  ;;  %v487_v7 = vmul.f32 %v387_v30, %v387_v30  ;;  %1150 = vmatmul.msk.f32.vlgmr.msra.gmra.mxu2 %vm585_vm0, %v1637_v3 }
  0xc5   : > { %v1254_v18 = vpop.eup %1253  ;;  %v519_v8 = vmul.f32 %v455_v9, %v455_v9 }
  0xc6   : > { %824 = vmatpush.msra.mxu3 %v1254_v18  ;;  %1257 = vpow2.f32 %v578_v41  ;;  %v550_v28 = vmul.f32 -5e+19, %v534_v20  ;;  %v503_v51 = vadd.f32 %v487_v7, %v471_v38 }
  0xc7   : > { %1151 = vmatmul.msk.f32.vlgmr.msra.gmra.mxu3 %vm585_vm0, %v1637_v3 }
  0xc8   : > { %v580_v21 = vmul.f32 1.442695, %v550_v28  ;;  %v535_v13 = vadd.f32 %v519_v8, %v503_v51 }
  0xc9   : > { %v1256_v39 = vpop.eup %1255 }
  0xca   : > { %844 = vmatpush.msrb.mxu0 %v1256_v39  ;;  %1259 = vpow2.f32 %v580_v21  ;;  %v551_v56 = vmul.f32 -5e+19, %v535_v13 }
  0xcb   : > { %1152 = vmatmul.msk.f32.vlgmr.msrb.gmra.mxu0 %vm585_vm0, %v1637_v3 }
  0xcc   : > { %v1258_v62 = vpop.eup %1257  ;;  %v582_v31 = vmul.f32 1.442695, %v551_v56 }
  0xcd   : > { %864 = vmatpush.msrb.mxu1 %v1258_v62 }
  0xce   : > { %1261 = vpow2.f32 %v582_v31  ;;  %1153 = vmatmul.msk.f32.vlgmr.msrb.gmra.mxu1 %vm585_vm0, %v1637_v3 }
  0xd0   : > { %v1260_v53 = vpop.eup %1259 }
  0xd1   : > { %884 = vmatpush.msrb.mxu2 %v1260_v53 }
  0xd2   : > { %1154 = vmatmul.msk.f32.vlgmr.msrb.gmra.mxu2 %vm585_vm0, %v1637_v3 }
  0xd4   : > { %v1262_v54 = vpop.eup %1261 }
  0xd5   : > { %904 = vmatpush.msrb.mxu3 %v1262_v54 }
  0xd6   : > { %1155 = vmatmul.msk.f32.vlgmr.msrb.gmra.mxu3 %vm585_vm0, %v1637_v3 }
 0x12f   : > { %v606_v19 = vpop.f32.mrf.mxu0 }
 0x130   : > { %v626_v55 = vpop.f32.mrf.mxu1 }
 0x131   : > { %v933_v35 = vrot.slane %v626_v55, 7 }
 0x133   : > { %v948_v48 = vsel %vm947_vm3, %v606_v19, %v933_v35 }
 0x137   : > { %v646_v14 = vpop.f32.mrf.mxu2  ;;  %v686_v0 = vpop.f32.mrf.mxu0 }
 0x138   : > { %v666_v63 = vpop.f32.mrf.mxu3  ;;  %v706_v1 = vpop.f32.mrf.mxu1  ;;  %v934_v11 = vrot.slane %v646_v14, 6  ;;  %v936_v6 = vrot.slane %v686_v0, 4 }
 0x139   : > { %v935_v15 = vrot.slane %v666_v63, 5  ;;  %v937_v32 = vrot.slane %v706_v1, 3 }
 0x13b   : > { %v950_v3 = vsel %vm949_vm1, %v934_v11, %v935_v15  ;;  %v954_v36 = vsel %vm953_vm2, %v936_v6, %v937_v32 }
 0x13c   : > { %v952_v2 = vsel %vm951_vm4, %v948_v48, %v950_v3 }
 0x13f   : > { %v726_v17 = vpop.f32.mrf.mxu2  ;;  %v766_v16 = vpop.f32.mrf.mxu0 }
 0x140   : > { %v938_v33 = vrot.slane %v726_v17, 2  ;;  %v746_v52 = vpop.f32.mrf.mxu3  ;;  %v786_v34 = vpop.f32.mrf.mxu1 }
 0x141   : > { %v939_v42 = vrot.slane %v746_v52, 1  ;;  %v940_v60 = vrot.slane %v786_v34, 7 }
 0x143   : > { %v956_v37 = vsel %vm955_vm5, %v938_v33, %v939_v42  ;;  %v961_v9 = vsel %vm947_vm3, %v766_v16, %v940_v60 }
 0x144   : > { %v958_v27 = vsel %vm957_vm6, %v954_v36, %v956_v37 }
 0x145   : > { %v960_v49 = vsel %vm959_vm7, %v952_v2, %v958_v27 }
 0x146   : > { %v979_v50 = vmul.f32 2.222121e+22, %v960_v49 }
 0x147   : > { %v806_v44 = vpop.f32.mrf.mxu2 }
 0x148   : > { %1263 = vrsqrt.f32 %v979_v50  ;;  %v846_v25 = vpop.f32.mrf.mxu0  ;;  %v941_v26 = vrot.slane %v806_v44, 6  ;;  %vm988_vm8 = vcmp.eq.f32.partialorder %v979_v50, inf  ;;  %v991_v20 = vand.u32 2147483648, %v979_v50 }
 0x149   : > { %v943_v45 = vrot.slane %v846_v25, 4  ;;  %vm990_vm9 = vcmp.eq.f32.partialorder %v979_v50, 0.0 }
 0x14a   : > { %v826_v10 = vpop.f32.mrf.mxu3 }
 0x14b   : > { %v866_v23 = vpop.f32.mrf.mxu1  ;;  %v942_v57 = vrot.slane %v826_v10, 5 }
 0x14c   : > { %v944_v59 = vrot.slane %v866_v23, 3 }
 0x14d   : > { %v962_v4 = vsel %vm949_vm1, %v941_v26, %v942_v57 }
 0x14e   : > { %v1264_v40 = vpop.eup %1263  ;;  %v964_v5 = vsel %vm953_vm2, %v943_v45, %v944_v59  ;;  %v963_v38 = vsel %vm951_vm4, %v961_v9, %v962_v4 }
 0x14f   : > { %v982_v22 = vmul.f32 %v1264_v40, %v979_v50 }
 0x151   : > { %v983_v46 = vmul.f32 %v1264_v40, %v982_v22 }
 0x153   : > { %v984_v43 = vmul.f32 0.5, %v983_v46 }
 0x155   : > { %v886_v12 = vpop.f32.mrf.mxu2  ;;  %v985_v58 = vsub.f32 1.5, %v984_v43 }
 0x156   : > { %v945_v24 = vrot.slane %v886_v12, 2 }
 0x157   : > { %v986_v47 = vmul.f32 %v1264_v40, %v985_v58 }
 0x159   : > { %v906_v61 = vpop.f32.mrf.mxu3  ;;  %v987_v30 = vmul.f32 %v986_v47, %v979_v50 }
 0x15a   : > { %v946_v29 = vrot.slane %v906_v61, 1 }
 0x15b   : > { %v989_v18 = vsel %vm988_vm8, %v979_v50, %v987_v30 }
 0x15c   : > { %v965_v41 = vsel %vm955_vm5, %v945_v24, %v946_v29  ;;  %v992_v28 = vsel %vm990_vm9, %v991_v20, %v989_v18 }
 0x15d   : > { %v966_v7 = vsel %vm957_vm6, %v964_v5, %v965_v41  ;;  %1005 = vst [vmem:[%s224_s30] sm:$0xff] %v992_v28 }
 0x15e   : > { %v967_v8 = vsel %vm959_vm7, %v963_v38, %v966_v7 }
 0x15f   : > { %v980_v51 = vmul.f32 2.222121e+22, %v967_v8 }
 0x161   : > { %1265 = vrsqrt.f32 %v980_v51  ;;  %vm1000_vm10 = vcmp.eq.f32.partialorder %v980_v51, inf  ;;  %v1003_v54 = vand.u32 2147483648, %v980_v51  ;;  %vm1002_vm11 = vcmp.eq.f32.partialorder %v980_v51, 0.0 }
 0x167   : > { %v1266_v21 = vpop.eup %1265 }
 0x168   : > { %v994_v13 = vmul.f32 %v1266_v21, %v980_v51 }
 0x16a   : > { %v995_v39 = vmul.f32 %v1266_v21, %v994_v13 }
 0x16c   : > { %v996_v56 = vmul.f32 0.5, %v995_v39 }
 0x16e   : > { %v997_v62 = vsub.f32 1.5, %v996_v56 }
 0x170   : > { %v998_v31 = vmul.f32 %v1266_v21, %v997_v62 }
 0x172   : > { %v999_v53 = vmul.f32 %v998_v31, %v980_v51 }
 0x174   : > { %v1001_v19 = vsel %vm1000_vm10, %v980_v51, %v999_v53 }
 0x175   : > { %v1004_v55 = vsel %vm1002_vm11, %v1003_v54, %v1001_v19 }
 0x176   : > { %1006 = vst [vmem:[%s224_s30 + $0x8] sm:$0xff] %v1004_v55 }
 0x177   : > { %1324 = shalt.err (!%p1321_p13)
}
 0x178   : > { %1163 = dma.vmem_to_hbm [thread:$0]  (%p1455_p9), %s1021_s8, 256, %s1023_s9, %s1008_s15  }
 0x179 PF: > { %s1034_s11 = sand.u32 1, %s1359_s12   ;;  %p1170_p0 = pnand %p1133_p12, %p1462_p11 }
 0x17a   : > { %s1035_s28 = scalar_lea.sflag [#allocation4], %s1034_s11 }
 0x17b   : > { %p1171_p1 = pneg %p1170_p0 }
 0x17d   : > { %1354 = dma.done.wait (%p1171_p1), %s1035_s28, 256  }
 0x17e   : > { %1356 = vsyncadd (%p1171_p1), %s1035_s28, 4294967040  ;;  %s19_s17 = sadd.s32 1, %s1379_s17   ;;  %s1762_s12 = smov %s1363_s13 }
 0x17f   : > { %p16_p2 = scmp.ge.s32.totalorder %s19_s17, 4   ;;  %s1763_s13 = smov %s1367_s14 }
 0x180   : > { %s1764_s14 = smov %s1460_s26  ;;  %s1765_s15 = smov %s1375_s16 }
 0x181   : > { %s1766_s16 = smov %s1768_s20  ;;  %18 = sbr.rel (!%p16_p2) target bundleno = 6 (0x6), region = 91 }
 0x186   :  { %1041 = vsyncpa [#allocation3], 1 }
 0x187   :  { %1043 = vsyncpa [#allocation3 + $0x1], 1 }
 0x188   :  { %1044 = vsyncpa [#allocation4], 1 }
 0x189   :  { %1046 = vsyncpa [#allocation4 + $0x1], 1 }

</bundles_post_ra>
